<compile_context>
chip_gen: v7x
topology: tpu7x:2x2x1
jax: 0.10.0
libtpu: 0.0.40
codegen_flags: <defaults>
</compile_context>

<pallas_src>
import itertools

import numpy as np
import jax
import jax.numpy as jnp
from jax.experimental import pallas as pl
from jax.experimental.pallas import tpu as pltpu


# ----------------------------- static helpers ------------------------------

def _conv_out(s, k, stride, pad):
    return (s + 2 * pad - k) // stride + 1


def _round_up(n, m):
    return ((n + m - 1) // m) * m


def _flat(n, d, h, w, grid):
    gd, gh, gw = grid
    return ((n * gd + d) * gh + h) * gw + w


def _mask_for(N, sp, lp):
    """[1, lp] 0/1 mask marking valid (non-ring, non-tail) padded-grid cols."""
    g = tuple(s + 2 for s in sp)
    m = np.zeros((N,) + g, np.float32)
    m[:, 1:1 + sp[0], 1:1 + sp[1], 1:1 + sp[2]] = 1.0
    m = m.reshape(1, -1)
    out = np.zeros((1, lp), np.float32)
    out[:, :m.shape[1]] = m
    return out


def _regrid_for(N, sp_in, sp_out, lp_in, lp_out):
    """0/1 matrix: stride-2 select on grid(sp_in) -> offset-1 slot of grid(sp_out)."""
    g_in = tuple(s + 2 for s in sp_in)
    g_out = tuple(s + 2 for s in sp_out)
    R = np.zeros((lp_in, lp_out), np.float32)
    for n in range(N):
        for od in range(sp_out[0]):
            for oh in range(sp_out[1]):
                for ow in range(sp_out[2]):
                    src = _flat(n, 1 + 2 * od, 1 + 2 * oh, 1 + 2 * ow, g_in)
                    dst = _flat(n, 1 + od, 1 + oh, 1 + ow, g_out)
                    R[src, dst] = 1.0
    return R


def _pool_for(N, sp, lp):
    """[lp, N] matrix implementing AdaptiveAvgPool3d((1,1,1)) over valid voxels."""
    g = tuple(s + 2 for s in sp)
    P = np.zeros((lp, N), np.float32)
    scale = 1.0 / float(sp[0] * sp[1] * sp[2])
    for n in range(N):
        for d in range(sp[0]):
            for h in range(sp[1]):
                for w in range(sp[2]):
                    P[_flat(n, 1 + d, 1 + h, 1 + w, g), n] = scale
    return P


# ------------------------- roll direction calibration ------------------------

def _detect_roll_sign():
    """Calibrate pltpu.roll's shift direction with a tiny kernel (one-time)."""
    def k(x_ref, o_ref):
        o_ref[...] = pltpu.roll(x_ref[...], shift=1, axis=1)

    x = jnp.tile(jax.lax.iota(jnp.float32, 256)[None, :], (8, 1))
    y = pl.pallas_call(
        k,
        out_shape=jax.ShapeDtypeStruct((8, 256), jnp.float32),
        in_specs=[pl.BlockSpec(memory_space=pltpu.MemorySpace.VMEM)],
        out_specs=pl.BlockSpec(memory_space=pltpu.MemorySpace.VMEM),
    )(x)
    # jnp.roll semantics: y[:, 1] == x[:, 0] == 0.  Opposite: y[:, 1] == 2.
    return 1 if float(y[0, 1]) == 0.0 else -1


# ------------------------------ Pallas kernel -------------------------------

def _make_kernel(meta, roll_sign):
    """Fused forward kernel: conv1 matmul + roll-based 3x3x3 blocks + head."""
    C = meta["channels"]
    blocks = meta["blocks"]                 # list of (Lp_in, deltas[27], down)
    n_down = sum(1 for (_, _, dn) in blocks if dn)
    n_in = 4 + 3 * len(blocks) + 3

    def kernel(*refs):
        in_refs = refs[:n_in]
        out_ref = refs[n_in]
        scratch = refs[n_in + 1:]
        regrid_bufs = scratch[:n_down]
        dma_sem = scratch[n_down] if n_down else None

        # Kick off all stride-2 regrid-matrix DMAs (HBM -> VMEM scratch) now so
        # they overlap with conv1 / early block compute instead of the prologue.
        copies = []
        d_i = 0
        for b_i, (_, _, down) in enumerate(blocks):
            if down:
                cp = pltpu.make_async_copy(in_refs[4 + 3 * b_i + 2],
                                           regrid_bufs[d_i], dma_sem.at[d_i])
                cp.start()
                copies.append(cp)
                d_i += 1

        # conv1_i (k=7, s=2, p=2) + ReLU on layer-1's padded grid (lane-dense
        # [C, Lp1]); bf16 operands, f32 accumulate; mask zeroes ring + tail.
        a = jnp.dot(in_refs[1][...], in_refs[0][...],
                    preferred_element_type=jnp.float32) + in_refs[2][...]
        a = jnp.maximum(a, 0.0) * in_refs[3][...]

        d_i = 0
        for b_i, (lp, deltas, down) in enumerate(blocks):
            wp_ref = in_refs[4 + 3 * b_i]         # [3, C, 9C] f32 (kd-planes)
            bb = in_refs[4 + 3 * b_i + 1][...]    # [C, 1]

            # 3x3x3 conv: 3 chunked matmuls over kd-planes; each tap is an XLU
            # roll of the VMEM-resident activation.  Interior columns never
            # wrap (|delta| <= ring offset); ring/tail junk is dropped below.
            acc = None
            for kd in range(3):
                rows = []
                for d in deltas[kd * 9:(kd + 1) * 9]:
                    s = (roll_sign * -d) % lp
                    rows.append(a if s == 0 else pltpu.roll(a, shift=s, axis=1))
                chunk = jnp.concatenate(rows, axis=0)          # [9C, lp]
                part = jnp.dot(wp_ref[kd], chunk,
                               preferred_element_type=jnp.float32)
                acc = part if acc is None else acc + part
            y = jnp.maximum(acc + bb, 0.0)

            if down:
                # exact stride-2 selection + re-grid onto next padded grid
                copies[d_i].wait()
                sel = regrid_bufs[d_i][...]                    # bf16 0/1
                a = jnp.dot(y.astype(jnp.bfloat16), sel,
                            preferred_element_type=jnp.float32)
                d_i += 1
            else:
                # same grid: re-zero the pad ring and lane tail
                a = y * in_refs[4 + 3 * b_i + 2][...]

        # AdaptiveAvgPool3d((1,1,1)) + Linear head (fused epilogue).
        base = 4 + 3 * len(blocks)
        pooled = jnp.dot(a, in_refs[base][...],
                         preferred_element_type=jnp.float32)   # [C, N]
        out_ref[...] = (jnp.dot(in_refs[base + 1][...], pooled,
                                preferred_element_type=jnp.float32)
                        + in_refs[base + 2][...])              # [O, N]

    return kernel


# --------------------------- host-side preparation --------------------------

def _conv1_patches(x, lp1, k=7, stride=2, pad=2):
    """im2col for conv1, columns on layer-1's padded grid (ring/tail = 0), bf16."""
    N, C, D, H, W = x.shape
    OD = _conv_out(D, k, stride, pad)
    OH = _conv_out(H, k, stride, pad)
    OW = _conv_out(W, k, stride, pad)
    xp = jnp.pad(x, ((0, 0), (0, 0), (pad, pad), (pad, pad), (pad, pad)))
    cols = []
    for kd in range(k):
        for kh in range(k):
            for kw in range(k):
                cols.append(xp[:, :,
                               kd:kd + stride * OD:stride,
                               kh:kh + stride * OH:stride,
                               kw:kw + stride * OW:stride])
    pat = jnp.stack(cols, axis=0)                  # [k^3, N, C, OD, OH, OW]
    pat = jnp.transpose(pat, (2, 0, 1, 3, 4, 5))   # [C, k^3, N, OD, OH, OW]
    grid = jnp.zeros((C, k ** 3, N, OD + 2, OH + 2, OW + 2), jnp.float32)
    grid = grid.at[:, :, :, 1:1 + OD, 1:1 + OH, 1:1 + OW].set(pat)
    flat = grid.reshape(C * k ** 3, N * (OD + 2) * (OH + 2) * (OW + 2))
    flat = jnp.pad(flat, ((0, 0), (0, lp1 - flat.shape[1])))
    return flat.astype(jnp.bfloat16)


def init_params(key, channels, numoutputs, layers, inplanes=2):
    keys = iter(jax.random.split(key, 128))

    def conv_init(cin, cout, k):
        fan_out = cout * k * k * k  # kaiming_normal_(mode='fan_out', relu)
        w = (jax.random.normal(next(keys), (cout, cin, k, k, k), jnp.float32)
             * jnp.sqrt(2.0 / fan_out))
        bound = 1.0 / float(np.sqrt(cin * k * k * k))
        b = jax.random.uniform(next(keys), (cout,), jnp.float32, -bound, bound)
        return w, b

    params = {"conv1": conv_init(inplanes, channels, 7)}
    blocks = []
    for li, nblocks in enumerate(layers):
        layer_blocks = []
        for bi in range(nblocks):
            downsample = (li != 0) and (bi == 0)
            layer_blocks.append((conv_init(channels, channels, 3), downsample))
        blocks.append(layer_blocks)
    params["layers"] = blocks

    bound = 1.0 / float(np.sqrt(channels))
    fc_w = jax.random.uniform(next(keys), (numoutputs, channels), jnp.float32,
                              -bound, bound)
    fc_b = jax.random.uniform(next(keys), (numoutputs,), jnp.float32,
                              -bound, bound)
    params["fc"] = (fc_w, fc_b)
    return params


def pack_params(params, x_shape):
    """Flatten params + constant 0/1 matrices into the kernel's input list."""
    N, cin, D, H, W = x_shape
    w1, b1 = params["conv1"]
    C = w1.shape[0]

    sp1 = tuple(_conv_out(s, 7, 2, 2) for s in (D, H, W))
    assert min(sp1) >= 1, "input too small for conv1"
    g1 = tuple(s + 2 for s in sp1)
    lp1 = _round_up(N * g1[0] * g1[1] * g1[2], 128)

    packed = [jnp.asarray(w1.reshape(C, -1), jnp.bfloat16),
              jnp.asarray(b1.reshape(C, 1), jnp.float32),
              jnp.asarray(_mask_for(N, sp1, lp1))]

    cur_sp, cur_lp = sp1, lp1
    block_meta = []
    regrid_shapes = []
    for layer_blocks in params["layers"]:
        for (w, b), down in layer_blocks:
            g = tuple(s + 2 for s in cur_sp)
            deltas = tuple((kd - 1) * g[1] * g[2] + (kh - 1) * g[2] + (kw - 1)
                           for kd, kh, kw in itertools.product(range(3), repeat=3))
            # [3, C, 9C]: kd-plane major, columns ordered (kh, kw, ci)
            wp = jnp.asarray(
                jnp.transpose(w, (2, 0, 3, 4, 1)).reshape(3, C, 9 * C),
                jnp.float32)
            packed += [wp, jnp.asarray(b.reshape(C, 1), jnp.float32)]
            if down:
                out_sp = tuple(_conv_out(s, 3, 2, 1) for s in cur_sp)
                assert min(out_sp) >= 1, "spatial size hit zero"
                out_g = tuple(s + 2 for s in out_sp)
                out_lp = _round_up(N * out_g[0] * out_g[1] * out_g[2], 128)
                packed.append(jnp.asarray(
                    _regrid_for(N, cur_sp, out_sp, cur_lp, out_lp),
                    jnp.bfloat16))
                regrid_shapes.append((cur_lp, out_lp))
                block_meta.append((cur_lp, deltas, True))
                cur_sp, cur_lp = out_sp, out_lp
            else:
                packed.append(jnp.asarray(_mask_for(N, cur_sp, cur_lp)))
                block_meta.append((cur_lp, deltas, False))

    packed.append(jnp.asarray(_pool_for(N, cur_sp, cur_lp)))
    fc_w, fc_b = params["fc"]
    O = fc_w.shape[0]
    packed += [jnp.asarray(fc_w, jnp.float32),
               jnp.asarray(fc_b.reshape(O, 1), jnp.float32)]

    meta = {"blocks": block_meta, "channels": C, "numout": O, "N": N,
            "lp1": lp1, "regrid_shapes": regrid_shapes}
    return packed, meta


def make_forward(meta):
    roll_sign = _detect_roll_sign()
    kernel = _make_kernel(meta, roll_sign)
    blocks = meta["blocks"]
    n_down = len(meta["regrid_shapes"])
    n_in = 4 + 3 * len(blocks) + 3

    vmem_spec = pl.BlockSpec(memory_space=pltpu.MemorySpace.VMEM)
    any_spec = pl.BlockSpec(memory_space=pl.ANY)
    in_specs = [vmem_spec] * n_in
    for b_i, (_, _, down) in enumerate(blocks):
        if down:
            in_specs[4 + 3 * b_i + 2] = any_spec   # regrid stays in HBM

    scratch_shapes = [pltpu.VMEM(shape, jnp.bfloat16)
                      for shape in meta["regrid_shapes"]]
    if n_down:
        scratch_shapes.append(pltpu.SemaphoreType.DMA((n_down,)))

    call = pl.pallas_call(
        kernel,
        out_shape=jax.ShapeDtypeStruct((meta["numout"], meta["N"]),
                                       jnp.float32),
        in_specs=in_specs,
        out_specs=pl.BlockSpec(memory_space=pltpu.MemorySpace.VMEM),
        scratch_shapes=scratch_shapes,
        compiler_params=pltpu.CompilerParams(
            vmem_limit_bytes=24 * 1024 * 1024),
    )

    lp1 = meta["lp1"]

    def forward(packed, x):
        p1 = _conv1_patches(x, lp1)            # [Cin*343, Lp1] bf16
        out = call(p1, *packed)
        return out.T                           # [N, numoutputs]

    return jax.jit(forward)


# ------------------------------ pure-XLA reference --------------------------

def reference_forward(params, x):
    def conv(x, w, b, stride, pad):
        y = jax.lax.conv_general_dilated(
            x, w, window_strides=(stride,) * 3, padding=[(pad, pad)] * 3,
            dimension_numbers=("NCDHW", "OIDHW", "NCDHW"),
            precision=jax.lax.Precision.HIGHEST)
        return y + b[None, :, None, None, None]

    w, b = params["conv1"]
    y = jax.nn.relu(conv(x, w, b, 2, 2))
    for layer_blocks in params["layers"]:
        for (w, b), down in layer_blocks:
            y = jax.nn.relu(conv(y, w, b, 2 if down else 1, 1))
    pooled = y.mean(axis=(2, 3, 4))
    fc_w, fc_b = params["fc"]
    return pooled @ fc_w.T + fc_b


# ----------------------------------- main ------------------------------------

if __name__ == "__main__":
    key = jax.random.PRNGKey(0)
    pkey, xkey = jax.random.split(key)

    channels = 8
    numoutputs = 3
    layers = [1, 1, 1, 1]
    inplanes = 2  # mri=False

    params = init_params(pkey, channels, numoutputs, layers, inplanes=inplanes)
    x = jax.random.normal(xkey, (2, inplanes, 16, 16, 16), jnp.float32)

    packed, meta = pack_params(params, x.shape)
    forward = make_forward(meta)

    out = forward(packed, x)
    jax.block_until_ready(out)

    assert out.shape == (2, numoutputs), out.shape
    assert bool(jnp.all(jnp.isfinite(out)))

    ref = reference_forward(params, x)
    err = float(np.max(np.abs(np.asarray(out) - np.asarray(ref))))
    assert np.allclose(np.asarray(out), np.asarray(ref),
                       rtol=2e-2, atol=2e-2), f"max abs err {err}"

    print("KERNEL_OK")
</pallas_src>

<mosaic_0001>
module attributes {stable_mosaic.version = 11 : i64} {
  func.func @k(%arg0: memref<8x256xf32, #tpu.memory_space<vmem>>, %arg1: memref<8x256xf32, #tpu.memory_space<vmem>>) attributes {dimension_semantics = [], scalar_prefetch = 0 : i64, scratch_operands = 0 : i64, tpu.core_type = #tpu.core_type<tc>} {
    %c0 = arith.constant 0 : index
    %c0_0 = arith.constant 0 : index
    %0 = vector.load %arg0[%c0, %c0_0] : memref<8x256xf32, #tpu.memory_space<vmem>>, vector<8x256xf32>
    %c1_i32 = arith.constant 1 : i32
    %1 = tpu.dynamic_rotate %0 by %c1_i32 dim 1 : vector<8x256xf32>, i32 -> vector<8x256xf32>
    %c0_1 = arith.constant 0 : index
    %c0_2 = arith.constant 0 : index
    %2 = vector.load %arg1[%c0_1, %c0_2] : memref<8x256xf32, #tpu.memory_space<vmem>>, vector<8x256xf32>
    tpu.vector_store %arg1[%c0_1, %c0_2], %1 {strides = array<i32>} : memref<8x256xf32, #tpu.memory_space<vmem>>, vector<8x256xf32>,
    return
  }
}

</mosaic_0001>

<bundles_post_ra>
// kernel: tpu_custom_call.1
= control target key start
LH: loop header
LB: loop body
LE: loop exit
PB: predicated region body
PF: predicated region fallthrough
CT: control target
= control target key end

     0   :  { %6 = vsyncpa [#allocation3], 0  ;;  %s137_s0 = inlined_call_operand.hbm [shape: f32[8,256], index: 0, kind: input, shape index: {}]   ;;  %s138_s1 = inlined_call_operand.hbm [shape: f32[8,256], index: 1, kind: output, shape index: {}]  }
   0x1   :  { %7 = vsyncpa [#allocation4], 0  ;;  %s100_s6 = smov [#allocation2]   ;;  %s52_s10 = scalar_lea.hbm %s137_s0, 256 }
   0x2   :  { %s14_s7 = sshll.u32 %s100_s6, 4  ;;  %p53_p0 = scmp.ne.s32.totalorder %s137_s0, %s52_s10  ;;  %s15_s7 = int_to_ptr.vmem [resolvable:$true] %s14_s7 }
   0x3   :  { %p56_p1 = scmp.lt.u32.totalorder %s52_s10, %s137_s0 }
   0x5   :  { %p58_p2 = pnand %p56_p1, %p53_p0 }
   0x7   :  { %61 = shalt.err (!%p58_p2)
}
   0x8   :  { %s62_s15 = scalar_lea.vmem %s15_s7, 256  ;;  %p67_p4 = scmp.lt.s32.totalorder %s15_s7, %s15_s7 }
   0x9   :  { %p63_p3 = scmp.ne.s32.totalorder %s15_s7, %s62_s15  ;;  %p68_p5 = scmp.lt.s32.totalorder %s62_s15, %s62_s15 }
   0xb   :  { %p69_p6 = por %p68_p5, %p67_p4 }
   0xd   :  { %p70_p7 = pnand %p69_p6, %p63_p3 }
   0xf   :  { %73 = shalt.err (!%p70_p7)
}
  0x10   :  { %17 = dma.hbm_to_vmem [thread:$0]  %s137_s0, 256, %s15_s7, [#allocation3]  }
  0x11   :  { %96 = dma.done.wait [#allocation3], 256  }
  0x12   :  { %97 = vsyncadd [#allocation3], 4294967040  ;;  %v21_v0 = vld [vmem:[#allocation2] sm:$0xff]  ;;  %s101_s18 = smov 1   ;;  %v22_v1 = vld [vmem:[#allocation2 + $0x8] sm:$0xff]  ;;  %v27_v2 = vlaneseq  ;;  %s102_s19 = smov [#allocation5]  }
  0x13   :  { %23 = vrot.lane.b32.xlu0 %v21_v0, %s101_s18  ;;  %s40_s20 = sshll.u32 %s102_s19, 4  ;;  %s41_s20 = int_to_ptr.vmem [resolvable:$true] %s40_s20 }
  0x14   :  { %v28_v3 = vand.u32 127, %v27_v2  ;;  %s74_s0 = scalar_lea.vmem %s41_s20, 256  ;;  %p79_p9 = scmp.lt.s32.totalorder %s41_s20, %s41_s20 }
  0x15   :  { %p75_p8 = scmp.ne.s32.totalorder %s41_s20, %s74_s0  ;;  %p80_p10 = scmp.lt.s32.totalorder %s74_s0, %s74_s0 }
  0x16   :  { %vm29_vm0 = vcmp.lt.s32.totalorder %v28_v3, 1 }
  0x17   :  { %25 = vrot.lane.b32.xlu0 %v22_v1, %s101_s18  ;;  %p81_p11 = por %p80_p10, %p79_p9 }
  0x19   :  { %p82_p12 = pnand %p81_p11, %p75_p8 }
  0x85   :  { %v24_v4 = vpop.permute.xlu0 %23 }
  0x89   :  { %v26_v5 = vpop.permute.xlu0 %25 }
  0x8a   :  { %v30_v6 = vsel %vm29_vm0, %v24_v4, %v26_v5  ;;  %v31_v7 = vsel %vm29_vm0, %v26_v5, %v24_v4 }
  0x8b   :  { %32 = vst [vmem:[#allocation5] sm:$0xff] %v31_v7  ;;  %33 = vst [vmem:[#allocation5 + $0x8] sm:$0xff] %v30_v6 }
  0x8c   :  { %85 = shalt.err (!%p82_p12)
}
  0x8d   :  { %s86_s23 = scalar_lea.hbm %s138_s1, 256 }
  0x8e   :  { %p87_p13 = scmp.ne.s32.totalorder %s138_s1, %s86_s23  ;;  %p90_p0 = scmp.lt.u32.totalorder %s86_s23, %s138_s1 }
  0x90   :  { %p92_p1 = pnand %p90_p0, %p87_p13 }
  0x92   :  { %95 = shalt.err (!%p92_p1)
}
  0x93   :  { %43 = dma.vmem_to_hbm [thread:$0]  %s41_s20, 256, %s138_s1, [#allocation4]  }
  0x94   :  { %98 = dma.done.wait [#allocation4], 256  }
  0x95   :  { %99 = vsyncadd [#allocation4], 4294967040 }
  0x96   :  { %47 = vsyncpa [#allocation3], 1 }
  0x97   :  { %48 = vsyncpa [#allocation4], 1 }

</bundles_post_ra>
